<compile_context>
chip_gen: v5e
topology: v5e:2x2
jax: 0.10.0
libtpu: 0.0.40
codegen_flags: <defaults>
</compile_context>

<pallas_src>
import jax
import jax.numpy as jnp
from jax import lax
from jax.experimental import pallas as pl
from jax.experimental.pallas import tpu as pltpu


# ----------------------------------------------------------------------------
# Phase 1 kernel: MLP_1 + MLP_2 per (batch, N-tile) + running global max.
# ----------------------------------------------------------------------------
def make_phase1_kernel(n1, n2, tn, n_valid, n_pad):
    needs_mask = (n_valid != n_pad)

    def kernel(x_ref, *refs):
        f1_ref, g_ref = refs[-2], refs[-1]
        params = refs[:-2]                      # interleaved (weight, bias)
        n = pl.program_id(1)

        # Running-max accumulator lives in the resident G output block
        # (block index constant along the N-tile axis).
        @pl.when(n == 0)
        def _():
            g_ref[...] = jnp.full(g_ref.shape, -jnp.inf, dtype=g_ref.dtype)

        it = iter(params)

        def dense(h):
            w = next(it)[...]                   # (c_out, c_in) bf16
            b = next(it)[...]                   # (c_out, 1)    f32
            y = jnp.dot(w, h.astype(w.dtype),
                        preferred_element_type=jnp.float32) + b
            return jnp.maximum(y, 0.0)

        h = x_ref[0]                            # (c_in, TN) f32
        for _ in range(n1):
            h = dense(h)
        # f1 is only ever consumed as a bf16 MXU operand -> store bf16.
        f1_ref[0] = h.astype(f1_ref.dtype)      # (m1, TN) bf16
        for _ in range(n2):
            h = dense(h)                        # (m2, TN) f32

        if needs_mask:
            # Exclude padded point columns from the global max.
            col = n * tn + lax.broadcasted_iota(jnp.int32, h.shape, 1)
            h = jnp.where(col < n_valid, h, -jnp.inf)
        g_ref[0] = jnp.maximum(g_ref[0], jnp.max(h, axis=-1, keepdims=True))

    return kernel


# ----------------------------------------------------------------------------
# Phase 2 kernel: MLP_3 on concat(G, f1) per (batch, N-tile), + softmax/sigmoid.
# ----------------------------------------------------------------------------
def make_phase2_kernel(n3, soft):
    def kernel(g_ref, f1_ref, *refs):
        out_ref = refs[-1]
        params = refs[:-1]
        it = iter(params)

        # Split concat(G, f1) weight: the global-feature term is a tiny
        # (c3, m2) x (m2, 1) matvec (bias folded in exactly once).
        w_g = next(it)[...]                     # (c3, m2) bf16
        w_f1 = next(it)[...]                    # (c3, m1) bf16
        b3 = next(it)[...]                      # (c3, 1)  f32
        g_term = jnp.dot(w_g, g_ref[0].astype(w_g.dtype),
                         preferred_element_type=jnp.float32) + b3   # (c3, 1)
        y = jnp.dot(w_f1, f1_ref[0],            # f1 already bf16
                    preferred_element_type=jnp.float32)             # (c3, TN)
        h = jnp.maximum(y + g_term, 0.0)

        def dense(h, relu=True):
            w = next(it)[...]
            b = next(it)[...]
            y = jnp.dot(w, h.astype(w.dtype),
                        preferred_element_type=jnp.float32) + b
            return jnp.maximum(y, 0.0) if relu else y

        for _ in range(n3 - 1):
            h = dense(h)
        # TODO(synk): Dropout is eval-mode identity (training-mode random drop
        # is not reproduced here).
        logits = dense(h, relu=False)           # (n_class, TN)

        if soft:
            m = jnp.max(logits, axis=0, keepdims=True)
            e = jnp.exp(logits - m)
            inv = pl.reciprocal(jnp.sum(e, axis=0, keepdims=True), approx=True)
            out = e * inv
        else:
            out = pl.reciprocal(1.0 + jnp.exp(-logits), approx=True)
        out_ref[0] = out.astype(out_ref.dtype)

    return kernel


# ----------------------------------------------------------------------------
# One-time parameter preparation (bf16 cast + concat-weight split).
# ----------------------------------------------------------------------------
def prepare_kernel_params(folded_params, *, n1, n2, m2, wdt=jnp.bfloat16):
    """Pre-cast weights to bf16 once and split the concat-layer weight into
    its G / f1 halves (torch concatenates (G, f1) along channels)."""
    p12 = [(w.astype(wdt), b) for (w, b) in folded_params[:n1 + n2]]
    w3, b3 = folded_params[n1 + n2]
    split3 = (w3[:, :m2].astype(wdt), w3[:, m2:].astype(wdt), b3)
    p3 = [(w.astype(wdt), b) for (w, b) in folded_params[n1 + n2 + 1:]]
    return p12, split3, p3


_VMEM_LIMIT = 32 * 1024 * 1024   # explicit scoped-VMEM budget (fits v7x 64 MiB)


# ----------------------------------------------------------------------------
# Wrapper: two pallas_calls, no HBM transposes, lane-dense N padding.
# ----------------------------------------------------------------------------
def pointnet_forward(x_ncw, prepped, n_class, *, n1, n2, n3, soft, tn_max=512):
    """x_ncw: (B, c_in, N).  Returns (B, n_class, N), PyTorch layout."""
    p12, (w3_g, w3_f1, b3), p3 = prepped
    B, c_in, N = x_ncw.shape
    m1 = p12[n1 - 1][0].shape[0]
    m2 = p12[n1 + n2 - 1][0].shape[0]

    # Lane-dense point tiling: TN is a multiple of 128; pad N to TN * nt.
    tn = min(tn_max, pl.cdiv(N, 128) * 128)
    n_pad = pl.cdiv(N, tn) * tn
    nt = n_pad // tn
    if n_pad != N:
        x_ncw = jnp.pad(x_ncw, ((0, 0), (0, 0), (0, n_pad - N)))

    def const_spec(shape):
        return pl.BlockSpec(shape, lambda b, n: (0, 0))

    # ---------------- Phase 1: MLP_1 + MLP_2 + global max ------------------
    args1 = [x_ncw]
    in_specs1 = [pl.BlockSpec((1, c_in, tn), lambda b, n: (b, 0, n))]
    for w, bb in p12:
        args1 += [w, bb]
        in_specs1 += [const_spec(w.shape), const_spec(bb.shape)]

    f1_hbm, g = pl.pallas_call(
        make_phase1_kernel(n1, n2, tn, N, n_pad),
        out_shape=(jax.ShapeDtypeStruct((B, m1, n_pad), jnp.bfloat16),
                   jax.ShapeDtypeStruct((B, m2, 1), jnp.float32)),
        grid_spec=pltpu.PrefetchScalarGridSpec(
            num_scalar_prefetch=0,
            grid=(B, nt),
            in_specs=in_specs1,
            out_specs=[pl.BlockSpec((1, m1, tn), lambda b, n: (b, 0, n)),
                       pl.BlockSpec((1, m2, 1), lambda b, n: (b, 0, 0))]),
        compiler_params=pltpu.CompilerParams(
            dimension_semantics=("parallel", "arbitrary"),
            vmem_limit_bytes=_VMEM_LIMIT),
    )(*args1)

    # ---------------- Phase 2: MLP_3 on concat(G, f1) ----------------------
    args2 = [g, f1_hbm, w3_g, w3_f1, b3]
    in_specs2 = [pl.BlockSpec((1, m2, 1), lambda b, n: (b, 0, 0)),
                 pl.BlockSpec((1, m1, tn), lambda b, n: (b, 0, n)),
                 const_spec(w3_g.shape), const_spec(w3_f1.shape),
                 const_spec(b3.shape)]
    for w, bb in p3:
        args2 += [w, bb]
        in_specs2 += [const_spec(w.shape), const_spec(bb.shape)]

    out = pl.pallas_call(
        make_phase2_kernel(n3, soft),
        out_shape=jax.ShapeDtypeStruct((B, n_class, n_pad), jnp.float32),
        grid_spec=pltpu.PrefetchScalarGridSpec(
            num_scalar_prefetch=0,
            grid=(B, nt),
            in_specs=in_specs2,
            out_specs=pl.BlockSpec((1, n_class, tn), lambda b, n: (b, 0, n))),
        compiler_params=pltpu.CompilerParams(
            dimension_semantics=("parallel", "parallel"),
            vmem_limit_bytes=_VMEM_LIMIT),
    )(*args2)

    return out[:, :, :N] if n_pad != N else out


# ----------------------------------------------------------------------------
# Deterministic parameter construction (Conv1d(k=1) + BatchNorm1d folding)
# ----------------------------------------------------------------------------
def fold_conv_bn(w, b, gamma, beta, mean, var, eps=1e-5):
    # Eval-mode BN folded into the 1x1 conv:
    #   y = gamma * (Wx + b - mean) / sqrt(var+eps) + beta
    scale = gamma / jnp.sqrt(var + eps)
    w_eff = w * scale[:, None]                # (c_out, c_in)
    b_eff = scale * (b - mean) + beta         # (c_out,)
    return w_eff, b_eff[:, None]              # (c_out, c_in), (c_out, 1)


def init_conv_bn(key, c_in, c_out):
    k1, k2, k3, k4, k5, k6 = jax.random.split(key, 6)
    w = jax.random.normal(k1, (c_out, c_in), jnp.float32) / jnp.sqrt(float(c_in))
    b = 0.05 * jax.random.normal(k2, (c_out,), jnp.float32)
    gamma = 1.0 + 0.1 * jax.random.normal(k3, (c_out,), jnp.float32)
    beta = 0.1 * jax.random.normal(k4, (c_out,), jnp.float32)
    mean = 0.1 * jax.random.normal(k5, (c_out,), jnp.float32)
    var = jnp.abs(jax.random.normal(k6, (c_out,), jnp.float32)) + 0.5
    return fold_conv_bn(w, b, gamma, beta, mean, var)


def init_conv(key, c_in, c_out):
    k1, k2 = jax.random.split(key)
    w = jax.random.normal(k1, (c_out, c_in), jnp.float32) / jnp.sqrt(float(c_in))
    b = 0.05 * jax.random.normal(k2, (c_out,), jnp.float32)
    return w, b[:, None]


# ----------------------------------------------------------------------------
# Pure-JAX reference of the same folded graph (mirrors the kernel's bf16
# matmul operands / f32 accumulation, original concat form, exact
# softmax/sigmoid) — correctness check for the split-weight tiled kernels.
# ----------------------------------------------------------------------------
def pointnet_reference(x, params, *, n1, n2, n3, soft):
    def layer(h, w, b, relu=True):
        y = jnp.einsum("oc,bcn->bon", w.astype(jnp.bfloat16),
                       h.astype(jnp.bfloat16),
                       preferred_element_type=jnp.float32) + b
        return jnp.maximum(y, 0.0) if relu else y

    idx = 0
    h = x
    for _ in range(n1):
        h = layer(h, *params[idx]); idx += 1
    f1 = h
    for _ in range(n2):
        h = layer(h, *params[idx]); idx += 1
    g = jnp.max(h, axis=-1, keepdims=True)                       # (B, m2, 1)
    gf1 = jnp.concatenate(
        [jnp.broadcast_to(g, (h.shape[0], h.shape[1], f1.shape[-1])), f1],
        axis=1)                                                   # (B, m2+m1, N)
    h = gf1
    for _ in range(n3):
        h = layer(h, *params[idx]); idx += 1
    logits = layer(h, *params[idx], relu=False)
    return jax.nn.softmax(logits, axis=1) if soft else jax.nn.sigmoid(logits)


# ----------------------------------------------------------------------------
if __name__ == "__main__":
    # Small, module-consistent shapes.  N=200 (not a multiple of 128) plus
    # tn_max=128 exercises padding, lane-masking of the max, and the
    # multi-tile running-max accumulator (2 N-tiles).
    B, input_feat, subsample_size = 2, 4, 200
    MLP_1, MLP_2, MLP_3 = [32, 64], [64, 128], [64, 32]
    n_class = 6
    soft = True
    m1, m2 = MLP_1[-1], MLP_2[-1]

    key = jax.random.PRNGKey(0)
    kx, kp = jax.random.split(key)
    x = jax.random.normal(kx, (B, input_feat, subsample_size), jnp.float32)

    # Layer channel pairs (conv+bn+relu), then final conv (no bn / no relu).
    dims = []
    prev = input_feat
    for c in MLP_1:
        dims.append((prev, c)); prev = c
    prev = m1
    for c in MLP_2:
        dims.append((prev, c)); prev = c
    prev = m2 + m1
    for c in MLP_3:
        dims.append((prev, c)); prev = c

    keys = jax.random.split(kp, len(dims) + 1)
    folded_params = [init_conv_bn(k, ci, co) for k, (ci, co) in zip(keys[:-1], dims)]
    folded_params.append(init_conv(keys[-1], MLP_3[-1], n_class))

    prepped = prepare_kernel_params(
        folded_params, n1=len(MLP_1), n2=len(MLP_2), m2=m2)

    out = pointnet_forward(
        x, prepped, n_class,
        n1=len(MLP_1), n2=len(MLP_2), n3=len(MLP_3), soft=soft, tn_max=128)
    out = jax.block_until_ready(out)

    ref = pointnet_reference(
        x, folded_params, n1=len(MLP_1), n2=len(MLP_2), n3=len(MLP_3), soft=soft)

    assert out.shape == (B, n_class, subsample_size), out.shape
    assert jnp.allclose(out, ref, rtol=1e-2, atol=1e-2), "mismatch vs reference"
    print("KERNEL_OK")
</pallas_src>

<mosaic_0001>
module attributes {stable_mosaic.version = 11 : i64} {
  func.func @kernel(%arg0: i32, %arg1: i32, %arg2: memref<1x4x128xf32, #tpu.memory_space<vmem>>, %arg3: memref<32x4xbf16, #tpu.memory_space<vmem>>, %arg4: memref<32x1xf32, #tpu.memory_space<vmem>>, %arg5: memref<64x32xbf16, #tpu.memory_space<vmem>>, %arg6: memref<64x1xf32, #tpu.memory_space<vmem>>, %arg7: memref<64x64xbf16, #tpu.memory_space<vmem>>, %arg8: memref<64x1xf32, #tpu.memory_space<vmem>>, %arg9: memref<128x64xbf16, #tpu.memory_space<vmem>>, %arg10: memref<128x1xf32, #tpu.memory_space<vmem>>, %arg11: memref<1x64x128xbf16, #tpu.memory_space<vmem>>, %arg12: memref<1x128x1xf32, #tpu.memory_space<vmem>>) attributes {dimension_semantics = [#tpu.dimension_semantics<parallel>, #tpu.dimension_semantics<arbitrary>], iteration_bounds = array<i64: 2, 2>, scalar_prefetch = 0 : i64, scratch_operands = 0 : i64, tpu.core_type = #tpu.core_type<tc>, window_params = [{transform_indices = @transform_0, window_bounds = array<i64: 1, 4, 128>}, {pipeline_mode = #tpu.pipeline_mode<synchronous>, transform_indices = @transform_1, window_bounds = array<i64: 32, 4>}, {pipeline_mode = #tpu.pipeline_mode<synchronous>, transform_indices = @transform_2, window_bounds = array<i64: 32, 1>}, {pipeline_mode = #tpu.pipeline_mode<synchronous>, transform_indices = @transform_3, window_bounds = array<i64: 64, 32>}, {pipeline_mode = #tpu.pipeline_mode<synchronous>, transform_indices = @transform_4, window_bounds = array<i64: 64, 1>}, {pipeline_mode = #tpu.pipeline_mode<synchronous>, transform_indices = @transform_5, window_bounds = array<i64: 64, 64>}, {pipeline_mode = #tpu.pipeline_mode<synchronous>, transform_indices = @transform_6, window_bounds = array<i64: 64, 1>}, {pipeline_mode = #tpu.pipeline_mode<synchronous>, transform_indices = @transform_7, window_bounds = array<i64: 128, 64>}, {pipeline_mode = #tpu.pipeline_mode<synchronous>, transform_indices = @transform_8, window_bounds = array<i64: 128, 1>}, {transform_indices = @transform_9, window_bounds = array<i64: 1, 64, 128>}, {transform_indices = @transform_10, window_bounds = array<i64: 1, 128, 1>}]} {
    %c0_i32 = arith.constant 0 : i32
    %0 = arith.cmpi eq, %arg1, %c0_i32 : i32
    %1 = arith.extui %0 : i1 to i32
    %c0_i32_0 = arith.constant 0 : i32
    %2 = arith.cmpi ne, %1, %c0_i32_0 : i32
    scf.if %2 {
      %cst_37 = arith.constant 0xFF800000 : f32
      %57 = vector.broadcast %cst_37 : f32 to vector<1x128x1xf32>
      %c0_38 = arith.constant 0 : index
      %c0_39 = arith.constant 0 : index
      %c0_40 = arith.constant 0 : index
      %58 = vector.load %arg12[%c0_38, %c0_39, %c0_40] : memref<1x128x1xf32, #tpu.memory_space<vmem>>, vector<1x128x1xf32>
      tpu.vector_store %arg12[%c0_38, %c0_39, %c0_40], %57 {strides = array<i32>} : memref<1x128x1xf32, #tpu.memory_space<vmem>>, vector<1x128x1xf32>,
    } else {
    }
    %c0 = arith.constant 0 : index
    %c0_1 = arith.constant 0 : index
    %c0_2 = arith.constant 0 : index
    %3 = vector.load %arg2[%c0, %c0_1, %c0_2] : memref<1x4x128xf32, #tpu.memory_space<vmem>>, vector<1x4x128xf32>
    %4 = vector.shape_cast %3 : vector<1x4x128xf32> to vector<4x128xf32>
    %c0_3 = arith.constant 0 : index
    %c0_4 = arith.constant 0 : index
    %5 = vector.load %arg3[%c0_3, %c0_4] : memref<32x4xbf16, #tpu.memory_space<vmem>>, vector<32x4xbf16>
    %c0_5 = arith.constant 0 : index
    %c0_6 = arith.constant 0 : index
    %6 = vector.load %arg4[%c0_5, %c0_6] : memref<32x1xf32, #tpu.memory_space<vmem>>, vector<32x1xf32>
    %7 = arith.truncf %4 : vector<4x128xf32> to vector<4x128xbf16>
    %cst = arith.constant dense<0.000000e+00> : vector<32x128xf32>
    %8 = tpu.matmul %5, %7, %cst {dimension_numbers = #tpu.dot_dimension_numbers<[1], [0], [0], [1], [0, 0, 1, 1], [], []>} : vector<32x4xbf16>, vector<4x128xbf16>, vector<32x128xf32> -> vector<32x128xf32>
    %9 = vector.broadcast %6 : vector<32x1xf32> to vector<32x128xf32>
    %10 = arith.addf %8, %9 : vector<32x128xf32>
    %cst_7 = arith.constant 0.000000e+00 : f32
    %11 = vector.broadcast %cst_7 : f32 to vector<32x128xf32>
    %12 = arith.maximumf %10, %11 : vector<32x128xf32>
    %c0_8 = arith.constant 0 : index
    %c0_9 = arith.constant 0 : index
    %13 = vector.load %arg5[%c0_8, %c0_9] : memref<64x32xbf16, #tpu.memory_space<vmem>>, vector<64x32xbf16>
    %c0_10 = arith.constant 0 : index
    %c0_11 = arith.constant 0 : index
    %14 = vector.load %arg6[%c0_10, %c0_11] : memref<64x1xf32, #tpu.memory_space<vmem>>, vector<64x1xf32>
    %15 = arith.truncf %12 : vector<32x128xf32> to vector<32x128xbf16>
    %cst_12 = arith.constant dense<0.000000e+00> : vector<64x128xf32>
    %16 = tpu.matmul %13, %15, %cst_12 {dimension_numbers = #tpu.dot_dimension_numbers<[1], [0], [0], [1], [0, 0, 1, 1], [], []>} : vector<64x32xbf16>, vector<32x128xbf16>, vector<64x128xf32> -> vector<64x128xf32>
    %17 = vector.broadcast %14 : vector<64x1xf32> to vector<64x128xf32>
    %18 = arith.addf %16, %17 : vector<64x128xf32>
    %cst_13 = arith.constant 0.000000e+00 : f32
    %19 = vector.broadcast %cst_13 : f32 to vector<64x128xf32>
    %20 = arith.maximumf %18, %19 : vector<64x128xf32>
    %21 = arith.truncf %20 : vector<64x128xf32> to vector<64x128xbf16>
    %c0_14 = arith.constant 0 : index
    %c0_15 = arith.constant 0 : index
    %c0_16 = arith.constant 0 : index
    %22 = vector.load %arg11[%c0_14, %c0_15, %c0_16] : memref<1x64x128xbf16, #tpu.memory_space<vmem>>, vector<1x64x128xbf16>
    %23 = vector.shape_cast %22 : vector<1x64x128xbf16> to vector<64x128xbf16>
    %24 = vector.shape_cast %21 : vector<64x128xbf16> to vector<1x64x128xbf16>
    tpu.vector_store %arg11[%c0_14, %c0_15, %c0_16], %24 {strides = array<i32>} : memref<1x64x128xbf16, #tpu.memory_space<vmem>>, vector<1x64x128xbf16>,
    %c0_17 = arith.constant 0 : index
    %c0_18 = arith.constant 0 : index
    %25 = vector.load %arg7[%c0_17, %c0_18] : memref<64x64xbf16, #tpu.memory_space<vmem>>, vector<64x64xbf16>
    %c0_19 = arith.constant 0 : index
    %c0_20 = arith.constant 0 : index
    %26 = vector.load %arg8[%c0_19, %c0_20] : memref<64x1xf32, #tpu.memory_space<vmem>>, vector<64x1xf32>
    %27 = arith.truncf %20 : vector<64x128xf32> to vector<64x128xbf16>
    %cst_21 = arith.constant dense<0.000000e+00> : vector<64x128xf32>
    %28 = tpu.matmul %25, %27, %cst_21 {dimension_numbers = #tpu.dot_dimension_numbers<[1], [0], [0], [1], [0, 0, 1, 1], [], []>} : vector<64x64xbf16>, vector<64x128xbf16>, vector<64x128xf32> -> vector<64x128xf32>
    %29 = vector.broadcast %26 : vector<64x1xf32> to vector<64x128xf32>
    %30 = arith.addf %28, %29 : vector<64x128xf32>
    %cst_22 = arith.constant 0.000000e+00 : f32
    %31 = vector.broadcast %cst_22 : f32 to vector<64x128xf32>
    %32 = arith.maximumf %30, %31 : vector<64x128xf32>
    %c0_23 = arith.constant 0 : index
    %c0_24 = arith.constant 0 : index
    %33 = vector.load %arg9[%c0_23, %c0_24] : memref<128x64xbf16, #tpu.memory_space<vmem>>, vector<128x64xbf16>
    %c0_25 = arith.constant 0 : index
    %c0_26 = arith.constant 0 : index
    %34 = vector.load %arg10[%c0_25, %c0_26] : memref<128x1xf32, #tpu.memory_space<vmem>>, vector<128x1xf32>
    %35 = arith.truncf %32 : vector<64x128xf32> to vector<64x128xbf16>
    %cst_27 = arith.constant dense<0.000000e+00> : vector<128x128xf32>
    %36 = tpu.matmul %33, %35, %cst_27 {dimension_numbers = #tpu.dot_dimension_numbers<[1], [0], [0], [1], [0, 0, 1, 1], [], []>} : vector<128x64xbf16>, vector<64x128xbf16>, vector<128x128xf32> -> vector<128x128xf32>
    %37 = vector.broadcast %34 : vector<128x1xf32> to vector<128x128xf32>
    %38 = arith.addf %36, %37 : vector<128x128xf32>
    %cst_28 = arith.constant 0.000000e+00 : f32
    %39 = vector.broadcast %cst_28 : f32 to vector<128x128xf32>
    %40 = arith.maximumf %38, %39 : vector<128x128xf32>
    %c128_i32 = arith.constant 128 : i32
    %41 = arith.muli %arg1, %c128_i32 : i32
    %42 = tpu.iota {dimensions = array<i32: 1>} : vector<128x128xi32>
    %43 = vector.broadcast %41 : i32 to vector<128x128xi32>
    %44 = arith.addi %43, %42 : vector<128x128xi32>
    %c200_i32 = arith.constant 200 : i32
    %45 = vector.broadcast %c200_i32 : i32 to vector<128x128xi32>
    %46 = arith.cmpi slt, %44, %45 : vector<128x128xi32>
    %cst_29 = arith.constant 0xFF800000 : f32
    %47 = vector.broadcast %cst_29 : f32 to vector<128x128xf32>
    %48 = arith.select %46, %40, %47 : vector<128x128xi1>, vector<128x128xf32>
    %c0_30 = arith.constant 0 : index
    %c0_31 = arith.constant 0 : index
    %c0_32 = arith.constant 0 : index
    %49 = vector.load %arg12[%c0_30, %c0_31, %c0_32] : memref<1x128x1xf32, #tpu.memory_space<vmem>>, vector<1x128x1xf32>
    %50 = vector.shape_cast %49 : vector<1x128x1xf32> to vector<128x1xf32>
    %cst_33 = arith.constant dense<0xFF800000> : vector<128xf32>
    %51 = vector.multi_reduction <maximumf>, %48, %cst_33 [1] : vector<128x128xf32> to vector<128xf32>
    %52 = vector.shape_cast %51 : vector<128xf32> to vector<128x1xf32>
    %53 = arith.maximumf %50, %52 : vector<128x1xf32>
    %c0_34 = arith.constant 0 : index
    %c0_35 = arith.constant 0 : index
    %c0_36 = arith.constant 0 : index
    %54 = vector.load %arg12[%c0_34, %c0_35, %c0_36] : memref<1x128x1xf32, #tpu.memory_space<vmem>>, vector<1x128x1xf32>
    %55 = vector.shape_cast %54 : vector<1x128x1xf32> to vector<128x1xf32>
    %56 = vector.shape_cast %53 : vector<128x1xf32> to vector<1x128x1xf32>
    tpu.vector_store %arg12[%c0_34, %c0_35, %c0_36], %56 {strides = array<i32>} : memref<1x128x1xf32, #tpu.memory_space<vmem>>, vector<1x128x1xf32>,
    return
  }
  func.func @transform_0(%arg0: i32, %arg1: i32) -> (i32, i32, i32) {
    %c0_i32 = arith.constant 0 : i32
    %c0_i32_0 = arith.constant 0 : i32
    return %arg0, %c0_i32, %arg1 : i32, i32, i32
  }
  func.func @transform_1(%arg0: i32, %arg1: i32) -> (i32, i32) {
    %c0_i32 = arith.constant 0 : i32
    %c0_i32_0 = arith.constant 0 : i32
    %c0_i32_1 = arith.constant 0 : i32
    return %c0_i32, %c0_i32_0 : i32, i32
  }
  func.func @transform_2(%arg0: i32, %arg1: i32) -> (i32, i32) {
    %c0_i32 = arith.constant 0 : i32
    %c0_i32_0 = arith.constant 0 : i32
    %c0_i32_1 = arith.constant 0 : i32
    return %c0_i32, %c0_i32_0 : i32, i32
  }
  func.func @transform_3(%arg0: i32, %arg1: i32) -> (i32, i32) {
    %c0_i32 = arith.constant 0 : i32
    %c0_i32_0 = arith.constant 0 : i32
    %c0_i32_1 = arith.constant 0 : i32
    return %c0_i32, %c0_i32_0 : i32, i32
  }
  func.func @transform_4(%arg0: i32, %arg1: i32) -> (i32, i32) {
    %c0_i32 = arith.constant 0 : i32
    %c0_i32_0 = arith.constant 0 : i32
    %c0_i32_1 = arith.constant 0 : i32
    return %c0_i32, %c0_i32_0 : i32, i32
  }
  func.func @transform_5(%arg0: i32, %arg1: i32) -> (i32, i32) {
    %c0_i32 = arith.constant 0 : i32
    %c0_i32_0 = arith.constant 0 : i32
    %c0_i32_1 = arith.constant 0 : i32
    return %c0_i32, %c0_i32_0 : i32, i32
  }
  func.func @transform_6(%arg0: i32, %arg1: i32) -> (i32, i32) {
    %c0_i32 = arith.constant 0 : i32
    %c0_i32_0 = arith.constant 0 : i32
    %c0_i32_1 = arith.constant 0 : i32
    return %c0_i32, %c0_i32_0 : i32, i32
  }
  func.func @transform_7(%arg0: i32, %arg1: i32) -> (i32, i32) {
    %c0_i32 = arith.constant 0 : i32
    %c0_i32_0 = arith.constant 0 : i32
    %c0_i32_1 = arith.constant 0 : i32
    return %c0_i32, %c0_i32_0 : i32, i32
  }
  func.func @transform_8(%arg0: i32, %arg1: i32) -> (i32, i32) {
    %c0_i32 = arith.constant 0 : i32
    %c0_i32_0 = arith.constant 0 : i32
    %c0_i32_1 = arith.constant 0 : i32
    return %c0_i32, %c0_i32_0 : i32, i32
  }
  func.func @transform_9(%arg0: i32, %arg1: i32) -> (i32, i32, i32) {
    %c0_i32 = arith.constant 0 : i32
    %c0_i32_0 = arith.constant 0 : i32
    return %arg0, %c0_i32, %arg1 : i32, i32, i32
  }
  func.func @transform_10(%arg0: i32, %arg1: i32) -> (i32, i32, i32) {
    %c0_i32 = arith.constant 0 : i32
    %c0_i32_0 = arith.constant 0 : i32
    %c0_i32_1 = arith.constant 0 : i32
    return %arg0, %c0_i32, %c0_i32_0 : i32, i32, i32
  }
}

</mosaic_0001>

<bundles_post_ra>
// kernel: tpu_custom_call.1
= control target key start
LH: loop header
LB: loop body
LE: loop exit
PB: predicated region body
PF: predicated region fallthrough
CT: control target
= control target key end

     0   :  { %16 = vsyncpa [#allocation3], 0  ;;  %s2086_s0 = inlined_call_operand.vmem [shape: f32[2,4,256], index: 0, kind: input, shape index: {}]   ;;  %s2087_s1 = inlined_call_operand.vmem [shape: bf16[32,4], index: 1, kind: input, shape index: {}]   ;;  %s2088_s2 = inlined_call_operand.vmem [shape: f32[32,1], index: 2, kind: input, shape index: {}]   ;;  %s2089_s3 = inlined_call_operand.vmem [shape: bf16[64,32], index: 3, kind: input, shape index: {}]   ;;  %s2090_s4 = inlined_call_operand.vmem [shape: f32[64,1], index: 4, kind: input, shape index: {}]   ;;  %s2091_s5 = inlined_call_operand.vmem [shape: bf16[64,64], index: 5, kind: input, shape index: {}]   ;;  %s2092_s6 = inlined_call_operand.vmem [shape: f32[64,1], index: 6, kind: input, shape index: {}]   ;;  %s2093_s7 = inlined_call_operand.vmem [shape: bf16[128,64], index: 7, kind: input, shape index: {}]   ;;  %s2094_s8 = inlined_call_operand.vmem [shape: f32[128,1], index: 8, kind: input, shape index: {}]   ;;  %s2095_s9 = inlined_call_operand.hbm [shape: bf16[2,64,256], index: 9, kind: output, shape index: {0}]   ;;  %s2096_s10 = inlined_call_operand.vmem [shape: f32[2,128,1], index: 10, kind: output, shape index: {1}]  }
   0x1   :  { %18 = vsyncpa [#allocation3 + $0x1], 0  ;;  %s1653_s13 = smov 0   ;;  %s1655_s14 = smov 0  }
   0x2   :  { %s1657_s15 = smov 0   ;;  %s1659_s16 = smov 0  }
   0x3   :  { %s1661_s17 = smov 0   ;;  %s1663_s18 = smov 0  }
   0x4   :  { %s1665_s19 = smov 0   ;;  %s1667_s20 = smov 0  }
   0x5 LB: > { %2104 = sst [smem:[#allocation5_spill]] %s1563_s13  ;;  %s1265_s21 = sadd.s32 4294967295, %s1591_s20   ;;  %s1591_s20 = sphi %s1667_s20, %s24_s20   ;;  %s1587_s19 = sphi %s1665_s19, %s2121_s19   ;;  %s1583_s18 = sphi %s1663_s18, %s2120_s18   ;;  %s1579_s17 = sphi %s1661_s17, %s2119_s17   ;;  %s1575_s16 = sphi %s1659_s16, %s2118_s16   ;;  %s1571_s15 = sphi %s1657_s15, %s2117_s15   ;;  %s1567_s14 = sphi %s1655_s14, %s2123_s14   ;;  %s1563_s13 = sphi %s1653_s13, %s2122_s13  }
   0x6   : > { %2105 = sst [smem:[#allocation6_spill]] %s1571_s15  ;;  %s1266_s22 = sadd.s32 4294967294, %s1591_s20  }
   0x7   : > { %2106 = sst [smem:[#allocation7_spill]] %s1583_s18  ;;  %s33_s23 = sadd.s32 1, %s1583_s18 }
   0x8   : > { %2107 = sst [smem:[#allocation8_spill]] %s1587_s19  ;;  %p34_p0 = scmp.ge.s32.totalorder %s33_s23, 2 }
   0x9   : > { %s36_s24 = sadd.s32 1, %s1587_s19  ;;  %p251_p1 = scmp.ne.s32.totalorder %s1571_s15, %s1567_s14 }
   0xa   : > { %p252_p2 = scmp.eq.s32.totalorder %s1265_s21, 3  ;;  %s2125_s23 = smov (%p34_p0, %s33_s23), 0 }
   0xb   : > { %2108 = sst [smem:[#allocation9_spill]] %s2125_s23  ;;  %s2127_s24 = smov (!%p34_p0, %s36_s24), %s1587_s19 }
   0xc   : > { %s237_s25 = ssub.s32 %s1583_s18, %s2125_s23  ;;  %p1704_p3 = por %p252_p2, %p251_p1 }
   0xd   : > { %p38_p4 = scmp.ge.s32.totalorder %s2127_s24, 2  ;;  %p257_p5 = scmp.ne.s32.totalorder %s1567_s14, %s1563_s13 }
   0xe   : > { %p258_p6 = scmp.eq.s32.totalorder %s1266_s22, 3  ;;  %p1269_p7 = scmp.ge.s32.totalorder %s1591_s20, 1 }
   0xf   : > { %s2129_s24 = smov (%p38_p4, %s2127_s24), 0  ;;  %p337_p9 = scmp.lt.s32.totalorder %s1591_s20, 5 }
  0x10   : > { %2110 = sst [smem:[#allocation10_spill]] %s2129_s24  ;;  %p1713_p8 = por %p258_p6, %p257_p5 }
  0x11   : > { %s236_s28 = ssub.s32 %s1587_s19, %s2129_s24  ;;  %s241_s29 = sadd.s32 1, %s1571_s15 }
  0x12   : > { %s2111_s27 = scalar_select %p1713_p8, 1, 0 }
  0x13   : > { %s238_s30 = sor.u32 %s237_s25, %s236_s28  ;;  %p338_p10 = pnand %p1269_p7, %p337_p9 }
  0x14   : > { %2112 = sst [smem:[#allocation11_spill]] %s2111_s27  ;;  %p239_p11 = scmp.eq.s32.totalorder %s238_s30, 0 }
  0x15   : > { %341 = sbr.rel (%p338_p10) target bundleno = 967 (0x3c7), region = 56  ;;  %s373_s12 = sand.u32 (!%p338_p10), 1, %s1567_s14  }
  0x16   : > { %s1722_s11 = scalar_select %p239_p11, %s1571_s15, %s241_s29  }
  0x17   : > { %p383_p12 = scmp.lt.s32.totalorder (!%p338_p10), %s1579_s17, 1  ;;  %s1270_s21 = sshll.u32 (!%p338_p10), %s373_s12, 5 }
  0x18   : > { %2113 = sst [smem:[#allocation12_spill]] %s1722_s11  ;;  %p385_p13 = scmp.lt.s32.totalorder (!%p338_p10), %s1575_s16, 1 }
  0x19   : > { %s1739_s13 = scalar_lea.vmem (!%p338_p10), [#allocation2], %s1270_s21  ;;  %p1275_p0 = scmp.ne.s32.totalorder (!%p338_p10), %s1575_s16, 0 }
  0x1a   : > { %s384_s22 = scalar_select %p383_p12, %s1579_s17, 1 }
  0x1b   : > { %s386_s24 = scalar_select %p385_p13, %s1575_s16, 1 }
  0x1c   : > { %s1271_s23 = sshll.u32 %s384_s22, 1  ;;  %s1372_s25 = sshll.u32 %s384_s22, 7 }
  0x1d   : > { %s388_s28 = sadd.s32 %s1271_s23, %s386_s24  ;;  %s1734_s19 = scalar_lea.vmem %s2096_s10, %s1372_s25 }
  0x1e   : > { %s1272_s18 = sshll.u32 %s388_s28, 2  ;;  %400 = sbr.rel (%p1275_p0) target bundleno = 52 (0x34), region = 60 }
  0x1f   : > { %s390_s27 = scalar_lea.vmem %s2086_s0, %s1272_s18 }
  0x23   : > { %vm401_vm0 = vcmask 7168   ;;  %v1593_v0 = vmov -inf  }
  0x24   : > { %402 = vst.msk [vmem:[%s1734_s19] sm:$0xff] %vm401_vm0, %v1593_v0 }
  0x25   : > { %403 = vst.msk [vmem:[%s1734_s19 + $0x8] sm:$0xff] %vm401_vm0, %v1593_v0 }
  0x26   : > { %404 = vst.msk [vmem:[%s1734_s19 + $0x10] sm:$0xff] %vm401_vm0, %v1593_v0 }
  0x27   : > { %405 = vst.msk [vmem:[%s1734_s19 + $0x18] sm:$0xff] %vm401_vm0, %v1593_v0 }
  0x28   : > { %406 = vst.msk [vmem:[%s1734_s19 + $0x20] sm:$0xff] %vm401_vm0, %v1593_v0 }
  0x29   : > { %407 = vst.msk [vmem:[%s1734_s19 + $0x28] sm:$0xff] %vm401_vm0, %v1593_v0 }
  0x2a   : > { %408 = vst.msk [vmem:[%s1734_s19 + $0x30] sm:$0xff] %vm401_vm0, %v1593_v0 }
  0x2b   : > { %409 = vst.msk [vmem:[%s1734_s19 + $0x38] sm:$0xff] %vm401_vm0, %v1593_v0 }
  0x2c   : > { %410 = vst.msk [vmem:[%s1734_s19 + $0x40] sm:$0xff] %vm401_vm0, %v1593_v0 }
  0x2d   : > { %411 = vst.msk [vmem:[%s1734_s19 + $0x48] sm:$0xff] %vm401_vm0, %v1593_v0 }
  0x2e   : > { %412 = vst.msk [vmem:[%s1734_s19 + $0x50] sm:$0xff] %vm401_vm0, %v1593_v0 }
  0x2f   : > { %413 = vst.msk [vmem:[%s1734_s19 + $0x58] sm:$0xff] %vm401_vm0, %v1593_v0 }
  0x30   : > { %414 = vst.msk [vmem:[%s1734_s19 + $0x60] sm:$0xff] %vm401_vm0, %v1593_v0 }
  0x31   : > { %415 = vst.msk [vmem:[%s1734_s19 + $0x68] sm:$0xff] %vm401_vm0, %v1593_v0 }
  0x32   : > { %416 = vst.msk [vmem:[%s1734_s19 + $0x70] sm:$0xff] %vm401_vm0, %v1593_v0 }
  0x33   : > { %417 = vst.msk [vmem:[%s1734_s19 + $0x78] sm:$0xff] %vm401_vm0, %v1593_v0 }
  0x34 PF: > { %v425_v1 = vld [vmem:[%s2088_s2 + $0x10] sm:$0xff]  ;;  %v423_v2 = vld [vmem:[%s2088_s2] sm:$0xff]  ;;  %vm465_vm1 = vcmask 1041408   ;;  %v1594_v4 = vmov 0   ;;  %vm458_vm2 = vcmask 31744   ;;  %v426_v8 = vld [vmem:[%s2088_s2 + $0x18] sm:$0xff] }
  0x35   : > { %v418_v3 = vld [vmem:[%s390_s27] sm:$0xf]  ;;  %1495 = vset.pattern.permute.xlu1 %v1594_v4  ;;  %1494 = vset.pattern.permute.xlu0 %v1594_v4  ;;  %v424_v9 = vld [vmem:[%s2088_s2 + $0x8] sm:$0xff]  ;;  %v503_v13 = vld [vmem:[%s2090_s4 + $0x18] sm:$0xff]  ;;  %vm570_vm3 = vcmask 261120   ;;  %vm736_vm4 = vcmask 523264  }
  0x36   : > { %v427_v5 = vpack.c.bf16 %v418_v3, %v418_v3  ;;  %440 = vperm.xlu0 %1494, %v425_v1   ;;  %430 = vperm.xlu1 %1495, %v423_v2   ;;  %v1373_v7 = vld [vmem:[%s2087_s1] sm:$0xff]  ;;  %v505_v11 = vld [vmem:[%s2090_s4 + $0x28] sm:$0xff]  ;;  %v650_v15 = vld [vmem:[%s2092_s6 + $0x30] sm:$0xff]  ;;  %s1366_s15 = sshll.u32 %s1575_s16, 7  ;;  %s1368_s18 = sshll.u32 %s1579_s17, 4 }
  0x37   : > { %1496 = vset.pattern.permute.xlu2 %v1594_v4  ;;  %v504_v10 = vld [vmem:[%s2090_s4 + $0x20] sm:$0xff]  ;;  %v1374_v12 = vld [vmem:[%s2087_s1 + $0x8] sm:$0xff]  ;;  %v651_v16 = vld [vmem:[%s2092_s6 + $0x38] sm:$0xff]  ;;  %s1150_s23 = sadd.s32 %s1575_s16, %s1368_s18  ;;  %s1153_s25 = sshll.u32 %s1739_s13, 4  ;;  %s1154_s25 = int_to_ptr.vmem [resolvable:$true] %s1153_s25 }
  0x38   : > { %v467_v6 = vsel %vm465_vm1, %v427_v5, 0  ;;  %v500_v14 = vld [vmem:[%s2090_s4] sm:$0xff]  ;;  %v649_v17 = vld [vmem:[%s2092_s6 + $0x28] sm:$0xff]  ;;  %v646_v18 = vld [vmem:[%s2092_s6 + $0x10] sm:$0xff]  ;;  %s1369_s24 = sshll.u32 %s1150_s23, 2  ;;  %s1135_s17 = scalar_lea.sflag [#allocation3], %s373_s12 }
  0x39   : > { %476 = vmatpush.bf16.msra.mxu0 %v467_v6  ;;  %v644_v19 = vld [vmem:[%s2092_s6] sm:$0xff]  ;;  %v645_v20 = vld [vmem:[%s2092_s6 + $0x8] sm:$0xff]  ;;  %v804_v22 = vld [vmem:[%s2094_s8 + $0x10] sm:$0xff]  ;;  %s1152_s22 = scalar_lea.hbm %s2095_s9, %s1369_s24 }
  0x3a   : > { %v803_v21 = vld [vmem:[%s2094_s8 + $0x8] sm:$0xff]  ;;  %v806_v23 = vld [vmem:[%s2094_s8 + $0x20] sm:$0xff]  ;;  %v809_v25 = vld [vmem:[%s2094_s8 + $0x38] sm:$0xff]  ;;  %s1155_s27 = sshll.u32 %s1152_s22, 4  ;;  %s1156_s27 = int_to_ptr.hbm [resolvable:$true] %s1155_s27 }
  0x3b   : > { %v807_v24 = vld [vmem:[%s2094_s8 + $0x28] sm:$0xff]  ;;  %v810_v26 = vld [vmem:[%s2094_s8 + $0x40] sm:$0xff]  ;;  %v812_v27 = vld [vmem:[%s2094_s8 + $0x50] sm:$0xff]  ;;  %s1511_s28 = sshra.s32 %s1156_s27, 4  ;;  %s1512_s28 = int_to_ptr.hbm [resolvable:$true] %s1511_s28 }
  0x3c   : > { %1284 = vmatmul.msk.bf16.vlgmr.msra.gmra.mxu0 %vm458_vm2, %v1373_v7  ;;  %v813_v28 = vld [vmem:[%s2094_s8 + $0x58] sm:$0xff]  ;;  %v815_v29 = vld [vmem:[%s2094_s8 + $0x68] sm:$0xff]  ;;  %v816_v30 = vld [vmem:[%s2094_s8 + $0x70] sm:$0xff]  ;;  %s1513_s16 = scalar_lea.hbm %s1512_s28, 32  ;;  %p1518_p5 = scmp.lt.s32.totalorder %s1512_s28, %s2095_s9 }
  0x3d   : > { %v506_v31 = vld [vmem:[%s2090_s4 + $0x30] sm:$0xff]  ;;  %v507_v33 = vld [vmem:[%s2090_s4 + $0x38] sm:$0xff]  ;;  %v501_v39 = vld [vmem:[%s2090_s4 + $0x8] sm:$0xff]  ;;  %p1514_p1 = scmp.ne.s32.totalorder %s1512_s28, %s1513_s16 }
  0x3e   : > { %445 = vperm.xlu0 %1494, %v426_v8   ;;  %435 = vperm.xlu1 %1495, %v424_v9   ;;  %v502_v35 = vld [vmem:[%s2090_s4 + $0x10] sm:$0xff]  ;;  %v648_v46 = vld [vmem:[%s2092_s6 + $0x20] sm:$0xff]  ;;  %v647_v54 = vld [vmem:[%s2092_s6 + $0x18] sm:$0xff] }
  0x3f   : > { %542 = vperm.xlu2 %1496, %v506_v31   ;;  %v1375_v55 = vld [vmem:[%s2089_s3] sm:$0xff]  ;;  %v805_v57 = vld [vmem:[%s2094_s8 + $0x18] sm:$0xff]  ;;  %v1376_v58 = vld [vmem:[%s2089_s3 + $0x8] sm:$0xff]  ;;  %p1515_p2 = pnand %p1514_p1, %p1704_p3 }
  0x40   : > { %v802_v56 = vld [vmem:[%s2094_s8] sm:$0xff]  ;;  %v808_v59 = vld [vmem:[%s2094_s8 + $0x30] sm:$0xff]  ;;  %v811_v60 = vld [vmem:[%s2094_s8 + $0x48] sm:$0xff] }
  0x41   : > { %v1377_v61 = vld [vmem:[%s2089_s3 + $0x10] sm:$0xff]  ;;  %v814_v62 = vld [vmem:[%s2094_s8 + $0x60] sm:$0xff]  ;;  %v817_v63 = vld [vmem:[%s2094_s8 + $0x78] sm:$0xff]  ;;  %p1516_p4 = pneg %p1515_p2 }
  0x42   : > { %v1378_v0 = vld [vmem:[%s2089_s3 + $0x18] sm:$0xff] }
  0x46   : > { %532 = vperm.xlu0 %1494, %v504_v10   ;;  %537 = vperm.xlu1 %1495, %v505_v11  }
  0x47   : > { %547 = vperm.xlu2 %1496, %v507_v33  }
  0x4c   : > { %1285 = vmatmul.msk.bf16.gmra.mxu0 %vm458_vm2, %v1374_v12 }
  0x4e   : > { %527 = vperm.xlu0 %1494, %v503_v13   ;;  %512 = vperm.xlu1 %1495, %v500_v14  }
  0x4f   : > { %522 = vperm.xlu2 %1496, %v502_v35  }
  0x56   : > { %684 = vperm.xlu0 %1494, %v650_v15   ;;  %689 = vperm.xlu1 %1495, %v651_v16  }
  0x57   : > { %517 = vperm.xlu2 %1496, %v501_v39  }
  0x5e   : > { %679 = vperm.xlu0 %1494, %v649_v17   ;;  %664 = vperm.xlu1 %1495, %v646_v18  }
  0x5f   : > { %674 = vperm.xlu2 %1496, %v648_v46  }
  0x66   : > { %654 = vperm.xlu0 %1494, %v644_v19   ;;  %659 = vperm.xlu1 %1495, %v645_v20  }
  0x67   : > { %669 = vperm.xlu2 %1496, %v647_v54  }
  0x6e   : > { %829 = vperm.xlu0 %1494, %v803_v21   ;;  %834 = vperm.xlu1 %1495, %v804_v22  }
  0x6f   : > { %824 = vperm.xlu2 %1496, %v802_v56  }
  0x76   : > { %844 = vperm.xlu0 %1494, %v806_v23   ;;  %849 = vperm.xlu1 %1495, %v807_v24  }
  0x77   : > { %839 = vperm.xlu2 %1496, %v805_v57   ;;  %v1379_v57 = vld [vmem:[%s2091_s5] sm:$0xff] }
  0x7e   : > { %859 = vperm.xlu0 %1494, %v809_v25   ;;  %864 = vperm.xlu1 %1495, %v810_v26  }
  0x7f   : > { %854 = vperm.xlu2 %1496, %v808_v59   ;;  %v1381_v59 = vld [vmem:[%s2091_s5 + $0x10] sm:$0xff] }
  0x86   : > { %874 = vperm.xlu0 %1494, %v812_v27   ;;  %879 = vperm.xlu1 %1495, %v813_v28  }
  0x87   : > { %869 = vperm.xlu2 %1496, %v811_v60   ;;  %v1382_v60 = vld [vmem:[%s2091_s5 + $0x18] sm:$0xff] }
  0x8e   : > { %889 = vperm.xlu0 %1494, %v815_v29   ;;  %894 = vperm.xlu1 %1495, %v816_v30  }
  0x8f   : > { %884 = vperm.xlu2 %1496, %v814_v62  }
  0x97   : > { %899 = vperm.xlu2 %1496, %v817_v63  }
  0x99   : > { %v543_v1 = vpop.permute.xlu2 %542 }
  0xa1   : > { %v548_v2 = vpop.permute.xlu2 %547 }
  0xa8   : > { %v441_v36 = vpop.permute.xlu0 %440  ;;  %v431_v37 = vpop.permute.xlu1 %430 }
  0xa9   : > { %v523_v4 = vpop.permute.xlu2 %522 }
  0xb0   : > { %v446_v40 = vpop.permute.xlu0 %445  ;;  %v436_v42 = vpop.permute.xlu1 %435 }
  0xb1   : > { %v518_v8 = vpop.permute.xlu2 %517 }
  0xb8   : > { %v538_v3 = vpop.permute.xlu1 %537  ;;  %v533_v14 = vpop.permute.xlu0 %532 }
  0xb9   : > { %v478_v32 = vpop.f32.mrf.mxu0 }
  0xba   : > { %v479_v47 = vadd.f32 %v478_v32, %v431_v37 }
  0xbc   : > { %v488_v52 = vmax.f32 %v479_v47, 0.0 }
  0xc0   : > { %v513_v6 = vpop.permute.xlu1 %512  ;;  %v528_v17 = vpop.permute.xlu0 %527 }
  0xc1   : > { %v480_v34 = vpop.f32.mrf.mxu0 }
  0xc2   : > { %v481_v44 = vadd.f32 %v480_v34, %v436_v42 }
  0xc4   : > { %v489_v50 = vmax.f32 %v481_v44, 0.0 }
  0xc6   : > { %v508_v53 = vpack.c.bf16 %v489_v50, %v488_v52 }
  0xc9   : > { %v483_v38 = vpop.f32.mrf.mxu0 }
  0xca   : > { %v484_v41 = vadd.f32 %v483_v38, %v441_v36 }
  0xcc   : > { %v490_v48 = vmax.f32 %v484_v41, 0.0 }
  0xd1   : > { %v485_v43 = vpop.f32.mrf.mxu0 }
  0xd2   : > { %v486_v45 = vadd.f32 %v485_v43, %v446_v40 }
  0xd4   : > { %v491_v49 = vmax.f32 %v486_v45, 0.0 }
  0xd6   : > { %v509_v51 = vpack.c.bf16 %v491_v49, %v490_v48 }
  0xd8   : > { %589 = vmatpush.bf16.msra.mxu1 %v509_v51 }
  0xdc   : > { %590 = vmatpush.bf16.msra.mxu1 %v508_v53 }
  0xdf   : > { %1302 = vmatmul.msk.bf16.vlgmr.msra.gmra.mxu1 %vm570_vm3, %v1375_v55 }
  0xef   : > { %1303 = vmatmul.msk.bf16.gmra.mxu1 %vm570_vm3, %v1376_v58  ;;  %v1380_v58 = vld [vmem:[%s2091_s5 + $0x8] sm:$0xff] }
  0xff   : > { %1304 = vmatmul.msk.bf16.gmra.mxu1 %vm570_vm3, %v1377_v61 }
 0x10f   : > { %1305 = vmatmul.msk.bf16.gmra.mxu1 %vm570_vm3, %v1378_v0 }
 0x15c   : > { %v592_v5 = vpop.f32.mrf.mxu1 }
 0x15d   : > { %v593_v7 = vadd.f32 %v592_v5, %v513_v6  ;;  %v675_v6 = vpop.permute.xlu2 %674 }
 0x15f   : > { %v612_v11 = vmax.f32 %v593_v7, 0.0 }
 0x161   : > { %v620_v51 = vpack.c.bf16 %v612_v11, %v612_v11 }
 0x163   : > { %v720_v55 = vunpack.c.l.b16 %v620_v51 }
 0x164   : > { %v594_v9 = vpop.f32.mrf.mxu1 }
 0x165   : > { %v595_v10 = vadd.f32 %v594_v9, %v518_v8 }
 0x167   : > { %v613_v12 = vmax.f32 %v595_v10, 0.0 }
 0x169   : > { %v1394_v13 = vpack.c.bf16 %v613_v12, %v612_v11  ;;  %v621_v48 = vpack.c.bf16 %v613_v12, %v613_v12 }
 0x16b   : > { %1395 = vst [vmem:[%s1739_s13] sm:$0xff] %v1394_v13   ;;  %v721_v54 = vunpack.c.l.b16 %v621_v48 }
 0x16c   : > { %v597_v15 = vpop.f32.mrf.mxu1 }
 0x16d   : > { %v598_v16 = vadd.f32 %v597_v15, %v523_v4  ;;  %v728_v56 = vpack.c.b16 %v721_v54, %v720_v55  ;;  %v685_v4 = vpop.permute.xlu0 %684 }
 0x16f   : > { %v614_v20 = vmax.f32 %v598_v16, 0.0  ;;  %v670_v16 = vpop.permute.xlu2 %669 }
 0x171   : > { %v622_v46 = vpack.c.bf16 %v614_v20, %v614_v20 }
 0x173   : > { %v722_v52 = vunpack.c.l.b16 %v622_v46 }
 0x174   : > { %v599_v18 = vpop.f32.mrf.mxu1 }
 0x175   : > { %v600_v19 = vadd.f32 %v599_v18, %v528_v17  ;;  %v680_v9 = vpop.permute.xlu0 %679 }
 0x177   : > { %v615_v21 = vmax.f32 %v600_v19, 0.0 }
 0x179   : > { %v1399_v22 = vpack.c.bf16 %v615_v21, %v614_v20  ;;  %v623_v43 = vpack.c.bf16 %v615_v21, %v615_v21 }
 0x17b   : > { %1411 = vst [vmem:[%s1739_s13 + $0x8] sm:$0xff] %v1399_v22   ;;  %v723_v50 = vunpack.c.l.b16 %v623_v43 }
 0x17c   : > { %v602_v23 = vpop.f32.mrf.mxu1 }
 0x17d   : > { %v603_v24 = vadd.f32 %v602_v23, %v533_v14  ;;  %v729_v53 = vpack.c.b16 %v723_v50, %v722_v52 }
 0x17f   : > { %v616_v27 = vmax.f32 %v603_v24, 0.0 }
 0x181   : > { %v624_v40 = vpack.c.bf16 %v616_v27, %v616_v27 }
 0x183   : > { %v724_v47 = vunpack.c.l.b16 %v624_v40  ;;  %v1390_v40 = vld [vmem:[%s2093_s7 + $0x38] sm:$0xff] }
 0x184   : > { %v604_v25 = vpop.f32.mrf.mxu1 }
 0x185   : > { %v605_v26 = vadd.f32 %v604_v25, %v538_v3  ;;  %v690_v3 = vpop.permute.xlu1 %689 }
 0x187   : > { %v617_v28 = vmax.f32 %v605_v26, 0.0  ;;  %v655_v26 = vpop.permute.xlu0 %654 }
 0x189   : > { %v1404_v29 = vpack.c.bf16 %v617_v28, %v616_v27  ;;  %v625_v37 = vpack.c.bf16 %v617_v28, %v617_v28 }
 0x18b   : > { %1412 = vst [vmem:[%s1739_s13 + $0x10] sm:$0xff] %v1404_v29   ;;  %v725_v45 = vunpack.c.l.b16 %v625_v37  ;;  %v1385_v37 = vld [vmem:[%s2093_s7 + $0x10] sm:$0xff] }
 0x18c   : > { %v607_v30 = vpop.f32.mrf.mxu1 }
 0x18d   : > { %v608_v31 = vadd.f32 %v607_v30, %v543_v1  ;;  %v730_v49 = vpack.c.b16 %v725_v45, %v724_v47  ;;  %v665_v7 = vpop.permute.xlu1 %664  ;;  %v1034_v45 = vstv %s1366_s15 }
 0x18f   : > { %v618_v32 = vmax.f32 %v608_v31, 0.0  ;;  %v830_v43 = vpop.permute.xlu0 %829 }
 0x191   : > { %v626_v36 = vpack.c.bf16 %v618_v32, %v618_v32 }
 0x193   : > { %v726_v41 = vunpack.c.l.b16 %v626_v36  ;;  %v1387_v36 = vld [vmem:[%s2093_s7 + $0x20] sm:$0xff] }
 0x194   : > { %v609_v33 = vpop.f32.mrf.mxu1 }
 0x195   : > { %v610_v34 = vadd.f32 %v609_v33, %v548_v2  ;;  %v660_v22 = vpop.permute.xlu1 %659  ;;  %v1383_v33 = vld [vmem:[%s2093_s7] sm:$0xff] }
 0x197   : > { %v619_v35 = vmax.f32 %v610_v34, 0.0  ;;  %v1386_v34 = vld [vmem:[%s2093_s7 + $0x18] sm:$0xff]  ;;  %v845_v52 = vpop.permute.xlu0 %844 }
 0x199   : > { %v1409_v38 = vpack.c.bf16 %v619_v35, %v618_v32  ;;  %v627_v39 = vpack.c.bf16 %v619_v35, %v619_v35  ;;  %v1384_v35 = vld [vmem:[%s2093_s7 + $0x8] sm:$0xff] }
 0x19b   : > { %1413 = vst [vmem:[%s1739_s13 + $0x18] sm:$0xff] %v1409_v38   ;;  %v727_v42 = vunpack.c.l.b16 %v627_v39  ;;  %v1388_v38 = vld [vmem:[%s2093_s7 + $0x28] sm:$0xff]  ;;  %v1389_v39 = vld [vmem:[%s2093_s7 + $0x30] sm:$0xff]  ;;  %s1517_s13 = scalar_lea.hbm %s2095_s9, 128 }
 0x19c   : > { %p1519_p6 = scmp.lt.s32.totalorder %s1517_s13, %s1513_s16 }
 0x19d   : > { %v731_v44 = vpack.c.b16 %v727_v42, %v726_v41  ;;  %v825_v41 = vpop.permute.xlu2 %824  ;;  %v1032_v42 = vlaneseq  ;;  %v835_v50 = vpop.permute.xlu1 %834 }
 0x19e   : > { %p1520_p7 = por %p1519_p6, %p1518_p5 }
 0x19f   : > { %753 = vmatpush.bf16.msra.mxu2 %v731_v44  ;;  %v1033_v44 = vand.u32 127, %v1032_v42 }
 0x1a0   : > { %p1521_p9 = pnand %p1520_p7, %p1516_p4 }
 0x1a1   : > { %v1957_v47 = vadd.s32 %v1034_v45, %v1033_v44 }
 0x1a3   : > { %754 = vmatpush.bf16.msra.mxu2 %v730_v49  ;;  %vm1036_vm5 = vcmp.lt.s32.totalorder %v1957_v47, 200 }
 0x1a5   : > { %v840_v46 = vpop.permute.xlu2 %839 }
 0x1a7   : > { %755 = vmatpush.bf16.msra.mxu2 %v729_v53 }
 0x1ab   : > { %756 = vmatpush.bf16.msra.mxu2 %v728_v56 }
 0x1ad   : > { %v855_v54 = vpop.permute.xlu2 %854 }
 0x1ae   : > { %1322 = vmatmul.msk.bf16.vlgmr.msra.gmra.mxu2 %vm736_vm4, %v1379_v57 }
 0x1be   : > { %1323 = vmatmul.msk.bf16.gmra.mxu2 %vm736_vm4, %v1380_v58 }
 0x1ce   : > { %1324 = vmatmul.msk.bf16.gmra.mxu2 %vm736_vm4, %v1381_v59 }
 0x1de   : > { %1325 = vmatmul.msk.bf16.gmra.mxu2 %vm736_vm4, %v1382_v60 }
 0x231   : > { %v758_v61 = vpop.f32.mrf.mxu2 }
 0x232   : > { %v759_v27 = vadd.f32 %v758_v61, %v655_v26 }
 0x234   : > { %v778_v31 = vmax.f32 %v759_v27, 0.0 }
 0x239   : > { %v760_v62 = vpop.f32.mrf.mxu2 }
 0x23a   : > { %v761_v23 = vadd.f32 %v760_v62, %v660_v22  ;;  %v850_v62 = vpop.permute.xlu1 %849 }
 0x23c   : > { %v779_v29 = vmax.f32 %v761_v23, 0.0 }
 0x23e   : > { %v818_v32 = vpack.c.bf16 %v779_v29, %v778_v31 }
 0x241   : > { %v763_v63 = vpop.f32.mrf.mxu2 }
 0x242   : > { %v764_v20 = vadd.f32 %v763_v63, %v665_v7 }
 0x244   : > { %v780_v28 = vmax.f32 %v764_v20, 0.0 }
 0x249   : > { %v765_v0 = vpop.f32.mrf.mxu2 }
 0x24a   : > { %v766_v17 = vadd.f32 %v765_v0, %v670_v16  ;;  %v860_v0 = vpop.permute.xlu0 %859 }
 0x24c   : > { %v781_v24 = vmax.f32 %v766_v17, 0.0 }
 0x24e   : > { %v819_v30 = vpack.c.bf16 %v781_v24, %v780_v28 }
 0x251   : > { %v768_v1 = vpop.f32.mrf.mxu2 }
 0x252   : > { %v769_v13 = vadd.f32 %v768_v1, %v675_v6  ;;  %v875_v27 = vpop.permute.xlu0 %874 }
 0x254   : > { %v782_v21 = vmax.f32 %v769_v13, 0.0 }
 0x259   : > { %v770_v2 = vpop.f32.mrf.mxu2 }
 0x25a   : > { %v771_v11 = vadd.f32 %v770_v2, %v680_v9  ;;  %v865_v9 = vpop.permute.xlu1 %864 }
 0x25c   : > { %v783_v18 = vmax.f32 %v771_v11, 0.0 }
 0x25e   : > { %v820_v25 = vpack.c.bf16 %v783_v18, %v782_v21  ;;  %v870_v18 = vpop.permute.xlu2 %869 }
 0x261   : > { %v773_v5 = vpop.f32.mrf.mxu2 }
 0x262   : > { %v774_v8 = vadd.f32 %v773_v5, %v685_v4 }
 0x264   : > { %v784_v14 = vmax.f32 %v774_v8, 0.0 }
 0x269   : > { %v775_v10 = vpop.f32.mrf.mxu2 }
 0x26a   : > { %v776_v12 = vadd.f32 %v775_v10, %v690_v3 }
 0x26c   : > { %v785_v15 = vmax.f32 %v776_v12, 0.0 }
 0x26e   : > { %v821_v19 = vpack.c.bf16 %v785_v15, %v784_v14 }
 0x270   : > { %970 = vmatpush.bf16.msrb.mxu0 %v821_v19  ;;  %1414 = vmatpush.bf16.msra.mxu3 %v821_v19 }
 0x274   : > { %971 = vmatpush.bf16.msrb.mxu0 %v820_v25  ;;  %1415 = vmatpush.bf16.msra.mxu3 %v820_v25 }
 0x278   : > { %972 = vmatpush.bf16.msrb.mxu0 %v819_v30  ;;  %1416 = vmatpush.bf16.msra.mxu3 %v819_v30 }
 0x27c   : > { %973 = vmatpush.bf16.msrb.mxu0 %v818_v32  ;;  %1417 = vmatpush.bf16.msra.mxu3 %v818_v32 }
 0x27f   : > { %1358 = vmatmul.msk.bf16.vlgmr.msrb.gmra.mxu0 %vm736_vm4, %v1383_v33  ;;  %1361 = vmatmul.msk.bf16.vlgmr.msra.gmra.mxu3 %vm736_vm4, %v1386_v34 }
 0x28f   : > { %1359 = vmatmul.msk.bf16.gmra.mxu0 %vm736_vm4, %v1384_v35  ;;  %1362 = vmatmul.msk.bf16.gmra.mxu3 %vm736_vm4, %v1387_v36  ;;  %v880_v36 = vpop.permute.xlu1 %879 }
 0x29f   : > { %1360 = vmatmul.msk.bf16.gmra.mxu0 %vm736_vm4, %v1385_v37  ;;  %1363 = vmatmul.msk.bf16.gmra.mxu3 %vm736_vm4, %v1388_v38 }
 0x2af   : > { %1364 = vmatmul.msk.bf16.gmra.mxu3 %vm736_vm4, %v1389_v39 }
 0x2bf   : > { %1365 = vmatmul.msk.bf16.gmra.mxu3 %vm736_vm4, %v1390_v40 }
 0x2fc   : > { %v975_v48 = vpop.f32.mrf.mxu0 }
 0x2fd   : > { %v976_v49 = vadd.f32 %v975_v48, %v825_v41  ;;  %v885_v41 = vpop.permute.xlu2 %884 }
 0x2ff   : > { %v1015_v51 = vmax.f32 %v976_v49, 0.0 }
 0x301   : > { %v1037_v53 = vsel %vm1036_vm5, %v1015_v51, -inf }
 0x302   : > { %v990_v55 = vpop.f32.mrf.mxu3  ;;  %1069 = vmax.xlane.f32.xlu0 %v1037_v53 }
 0x303   : > { %v991_v56 = vadd.f32 %v990_v55, %v855_v54 }
 0x304   : > { %v977_v57 = vpop.f32.mrf.mxu0 }
 0x305   : > { %v1021_v58 = vmax.f32 %v991_v56, 0.0  ;;  %v978_v59 = vadd.f32 %v977_v57, %v830_v43 }
 0x307   : > { %v1016_v60 = vmax.f32 %v978_v59, 0.0  ;;  %v1043_v61 = vsel %vm1036_vm5, %v1021_v58, -inf }
 0x308   : > { %1081 = vmax.xlane.f32.xlu2 %v1043_v61 }
 0x309   : > { %v1038_v63 = vsel %vm1036_vm5, %v1016_v60, -inf }
 0x30a   : > { %v992_v1 = vpop.f32.mrf.mxu3  ;;  %1071 = vmax.xlane.f32.xlu1 %v1038_v63 }
 0x30b   : > { %v993_v2 = vadd.f32 %v992_v1, %v860_v0 }
 0x30c   : > { %v980_v3 = vpop.f32.mrf.mxu0 }
 0x30d   : > { %v1022_v4 = vmax.f32 %v993_v2, 0.0  ;;  %v981_v5 = vadd.f32 %v980_v3, %v835_v50 }
 0x30f   : > { %v1017_v6 = vmax.f32 %v981_v5, 0.0  ;;  %v1044_v7 = vsel %vm1036_vm5, %v1022_v4, -inf }
 0x310   : > { %1083 = vmax.xlane.f32.xlu0 %v1044_v7 }
 0x311   : > { %v1039_v8 = vsel %vm1036_vm5, %v1017_v6, -inf }
 0x312   : > { %v995_v10 = vpop.f32.mrf.mxu3  ;;  %1073 = vmax.xlane.f32.xlu2 %v1039_v8 }
 0x313   : > { %v996_v11 = vadd.f32 %v995_v10, %v865_v9 }
 0x314   : > { %v982_v12 = vpop.f32.mrf.mxu0 }
 0x315   : > { %v1023_v13 = vmax.f32 %v996_v11, 0.0  ;;  %v983_v14 = vadd.f32 %v982_v12, %v840_v46  ;;  %v890_v46 = vpop.permute.xlu0 %889 }
 0x317   : > { %v1018_v15 = vmax.f32 %v983_v14, 0.0  ;;  %v1045_v16 = vsel %vm1036_vm5, %v1023_v13, -inf }
 0x318   : > { %1085 = vmax.xlane.f32.xlu1 %v1045_v16 }
 0x319   : > { %v1040_v17 = vsel %vm1036_vm5, %v1018_v15, -inf }
 0x31a   : > { %v997_v19 = vpop.f32.mrf.mxu3  ;;  %1075 = vmax.xlane.f32.xlu2 %v1040_v17 }
 0x31b   : > { %v998_v20 = vadd.f32 %v997_v19, %v870_v18 }
 0x31c   : > { %v985_v21 = vpop.f32.mrf.mxu0 }
 0x31d   : > { %v1024_v22 = vmax.f32 %v998_v20, 0.0  ;;  %v986_v23 = vadd.f32 %v985_v21, %v845_v52  ;;  %v895_v52 = vpop.permute.xlu1 %894 }
 0x31f   : > { %v1019_v24 = vmax.f32 %v986_v23, 0.0  ;;  %v1046_v25 = vsel %vm1036_vm5, %v1024_v22, -inf }
 0x321   : > { %v1041_v26 = vsel %vm1036_vm5, %v1019_v24, -inf }
 0x322   : > { %v1000_v28 = vpop.f32.mrf.mxu3  ;;  %1087 = vmax.xlane.f32.xlu2 %v1046_v25  ;;  %1077 = vmax.xlane.f32.xlu0 %v1041_v26 }
 0x323   : > { %v1001_v29 = vadd.f32 %v1000_v28, %v875_v27 }
 0x324   : > { %v987_v30 = vpop.f32.mrf.mxu0 }
 0x325   : > { %v1025_v31 = vmax.f32 %v1001_v29, 0.0  ;;  %v988_v32 = vadd.f32 %v987_v30, %v850_v62 }
 0x327   : > { %v1020_v33 = vmax.f32 %v988_v32, 0.0  ;;  %v1047_v35 = vsel %vm1036_vm5, %v1025_v31, -inf }
 0x329   : > { %v1042_v34 = vsel %vm1036_vm5, %v1020_v33, -inf }
 0x32a   : > { %v1002_v37 = vpop.f32.mrf.mxu3  ;;  %1079 = vmax.xlane.f32.xlu1 %v1042_v34  ;;  %1089 = vmax.xlane.f32.xlu0 %v1047_v35 }
 0x32b   : > { %v1003_v38 = vadd.f32 %v1002_v37, %v880_v36 }
 0x32d   : > { %v1026_v39 = vmax.f32 %v1003_v38, 0.0 }
 0x32f   : > { %v1048_v40 = vsel %vm1036_vm5, %v1026_v39, -inf }
 0x332   : > { %v1005_v42 = vpop.f32.mrf.mxu3  ;;  %1091 = vmax.xlane.f32.xlu1 %v1048_v40 }
 0x333   : > { %v1006_v43 = vadd.f32 %v1005_v42, %v885_v41 }
 0x335   : > { %v1027_v44 = vmax.f32 %v1006_v43, 0.0 }
 0x337   : > { %v1049_v45 = vsel %vm1036_vm5, %v1027_v44, -inf }
 0x338   : > { %1093 = vmax.xlane.f32.xlu2 %v1049_v45 }
 0x33a   : > { %v1007_v48 = vpop.f32.mrf.mxu3 }
 0x33b   : > { %v1008_v49 = vadd.f32 %v1007_v48, %v890_v46 }
 0x33d   : > { %v1028_v50 = vmax.f32 %v1008_v49, 0.0 }
 0x33f   : > { %v1050_v51 = vsel %vm1036_vm5, %v1028_v50, -inf }
 0x340   : > { %1095 = vmax.xlane.f32.xlu0 %v1050_v51 }
 0x342   : > { %v1010_v53 = vpop.f32.mrf.mxu3 }
 0x343   : > { %v1011_v54 = vadd.f32 %v1010_v53, %v895_v52 }
 0x345   : > { %v1029_v55 = vmax.f32 %v1011_v54, 0.0 }
 0x347   : > { %v1051_v56 = vsel %vm1036_vm5, %v1029_v55, -inf }
 0x348   : > { %1097 = vmax.xlane.f32.xlu1 %v1051_v56 }
 0x349   : > { %1524 = shalt.err (!%p1521_p9)
}
 0x34a   : > { %s1595_s12 = smov 64   ;;  %s1596_s23 = smov 128   ;;  %v900_v57 = vpop.permute.xlu2 %899  ;;  %v1012_v58 = vpop.f32.mrf.mxu3  ;;  %v1053_v62 = vld [vmem:[%s1734_s19] sm:$0xff]  ;;  %vm1117_vm6 = vcmask 7168   ;;  %v1059_v1 = vld [vmem:[%s1734_s19 + $0x30] sm:$0xff]  ;;  %v1054_v3 = vld [vmem:[%s1734_s19 + $0x8] sm:$0xff] }
 0x34b   : > { %s1597_s24 = smov 4   ;;  %v1013_v59 = vadd.f32 %v1012_v58, %v900_v57  ;;  %v1060_v6 = vld [vmem:[%s1734_s19 + $0x38] sm:$0xff]  ;;  %v1055_v8 = vld [vmem:[%s1734_s19 + $0x10] sm:$0xff]  ;;  %v1061_v12 = vld [vmem:[%s1734_s19 + $0x40] sm:$0xff] }
 0x34c   : > { %1418 = dma.vmem_to_hbm [thread:$0]  (%p1704_p3), %s1154_s25, 512, %s1156_s27, %s1135_s17, %s1595_s12, %s1596_s23, %s1597_s24  }
 0x34d   : > { %v1030_v60 = vmax.f32 %v1013_v59, 0.0  ;;  %v1056_v14 = vld [vmem:[%s1734_s19 + $0x18] sm:$0xff]  ;;  %v1062_v18 = vld [vmem:[%s1734_s19 + $0x48] sm:$0xff]  ;;  %v1057_v19 = vld [vmem:[%s1734_s19 + $0x20] sm:$0xff] }
 0x34e   : > { %v1058_v24 = vld [vmem:[%s1734_s19 + $0x28] sm:$0xff]  ;;  %v1063_v25 = vld [vmem:[%s1734_s19 + $0x50] sm:$0xff]  ;;  %v1064_v30 = vld [vmem:[%s1734_s19 + $0x58] sm:$0xff] }
 0x34f   : > { %v1052_v61 = vsel %vm1036_vm5, %v1030_v60, -inf  ;;  %v1065_v33 = vld [vmem:[%s1734_s19 + $0x60] sm:$0xff]  ;;  %v1066_v36 = vld [vmem:[%s1734_s19 + $0x68] sm:$0xff]  ;;  %v1067_v39 = vld [vmem:[%s1734_s19 + $0x70] sm:$0xff] }
 0x350   : > { %1099 = vmax.xlane.f32.xlu2 %v1052_v61  ;;  %v1068_v42 = vld [vmem:[%s1734_s19 + $0x78] sm:$0xff] }
 0x375   : > { %v1070_v63 = vpop.xlane.xlu0 %1069 }
 0x376   : > { %v1101_v0 = vmax.f32 %v1053_v62, %v1070_v63 }
 0x378   : > { %1118 = vst.msk [vmem:[%s1734_s19] sm:$0xff] %vm1117_vm6, %v1101_v0 }
 0x37b   : > { %v1082_v2 = vpop.xlane.xlu2 %1081 }
 0x37c   : > { %v1107_v4 = vmax.f32 %v1059_v1, %v1082_v2 }
 0x37d   : > { %v1072_v5 = vpop.xlane.xlu1 %1071 }
 0x37e   : > { %1124 = vst.msk [vmem:[%s1734_s19 + $0x30] sm:$0xff] %vm1117_vm6, %v1107_v4  ;;  %v1102_v47 = vmax.f32 %v1054_v3, %v1072_v5 }
 0x380   : > { %1119 = vst.msk [vmem:[%s1734_s19 + $0x8] sm:$0xff] %vm1117_vm6, %v1102_v47 }
 0x383   : > { %v1084_v7 = vpop.xlane.xlu0 %1083 }
 0x384   : > { %v1108_v9 = vmax.f32 %v1060_v6, %v1084_v7 }
 0x385   : > { %v1074_v10 = vpop.xlane.xlu2 %1073 }
 0x386   : > { %1125 = vst.msk [vmem:[%s1734_s19 + $0x38] sm:$0xff] %vm1117_vm6, %v1108_v9  ;;  %v1103_v11 = vmax.f32 %v1055_v8, %v1074_v10 }
 0x388   : > { %1120 = vst.msk [vmem:[%s1734_s19 + $0x10] sm:$0xff] %vm1117_vm6, %v1103_v11 }
 0x38b   : > { %v1086_v13 = vpop.xlane.xlu1 %1085 }
 0x38c   : > { %v1109_v15 = vmax.f32 %v1061_v12, %v1086_v13 }
 0x38d   : > { %v1076_v16 = vpop.xlane.xlu2 %1075 }
 0x38e   : > { %1126 = vst.msk [vmem:[%s1734_s19 + $0x40] sm:$0xff] %vm1117_vm6, %v1109_v15  ;;  %v1104_v17 = vmax.f32 %v1056_v14, %v1076_v16 }
 0x390   : > { %1121 = vst.msk [vmem:[%s1734_s19 + $0x18] sm:$0xff] %vm1117_vm6, %v1104_v17 }
 0x395   : > { %v1088_v20 = vpop.xlane.xlu2 %1087  ;;  %v1078_v21 = vpop.xlane.xlu0 %1077 }
 0x396   : > { %v1110_v22 = vmax.f32 %v1062_v18, %v1088_v20  ;;  %v1105_v23 = vmax.f32 %v1057_v19, %v1078_v21 }
 0x398   : > { %1127 = vst.msk [vmem:[%s1734_s19 + $0x48] sm:$0xff] %vm1117_vm6, %v1110_v22 }
 0x399   : > { %1122 = vst.msk [vmem:[%s1734_s19 + $0x20] sm:$0xff] %vm1117_vm6, %v1105_v23 }
 0x39d   : > { %v1080_v26 = vpop.xlane.xlu1 %1079  ;;  %v1090_v27 = vpop.xlane.xlu0 %1089 }
 0x39e   : > { %v1106_v28 = vmax.f32 %v1058_v24, %v1080_v26  ;;  %v1111_v29 = vmax.f32 %v1063_v25, %v1090_v27 }
 0x3a0   : > { %1123 = vst.msk [vmem:[%s1734_s19 + $0x28] sm:$0xff] %vm1117_vm6, %v1106_v28 }
 0x3a1   : > { %1128 = vst.msk [vmem:[%s1734_s19 + $0x50] sm:$0xff] %vm1117_vm6, %v1111_v29 }
 0x3a5   : > { %v1092_v31 = vpop.xlane.xlu1 %1091 }
 0x3a6   : > { %v1112_v32 = vmax.f32 %v1064_v30, %v1092_v31 }
 0x3a8   : > { %1129 = vst.msk [vmem:[%s1734_s19 + $0x58] sm:$0xff] %vm1117_vm6, %v1112_v32 }
 0x3ab   : > { %v1094_v34 = vpop.xlane.xlu2 %1093 }
 0x3ac   : > { %v1113_v35 = vmax.f32 %v1065_v33, %v1094_v34 }
 0x3ae   : > { %1130 = vst.msk [vmem:[%s1734_s19 + $0x60] sm:$0xff] %vm1117_vm6, %v1113_v35 }
 0x3b3   : > { %v1096_v37 = vpop.xlane.xlu0 %1095 }
 0x3b4   : > { %v1114_v38 = vmax.f32 %v1066_v36, %v1096_v37 }
 0x3b6   : > { %1131 = vst.msk [vmem:[%s1734_s19 + $0x68] sm:$0xff] %vm1117_vm6, %v1114_v38 }
 0x3bb   : > { %v1098_v40 = vpop.xlane.xlu1 %1097 }
 0x3bc   : > { %v1115_v41 = vmax.f32 %v1067_v39, %v1098_v40 }
 0x3be   : > { %1132 = vst.msk [vmem:[%s1734_s19 + $0x70] sm:$0xff] %vm1117_vm6, %v1115_v41 }
 0x3c3   : > { %v1100_v43 = vpop.xlane.xlu2 %1099 }
 0x3c4   : > { %v1116_v44 = vmax.f32 %v1068_v42, %v1100_v43 }
 0x3c6   : > { %1133 = vst.msk [vmem:[%s1734_s19 + $0x78] sm:$0xff] %vm1117_vm6, %v1116_v44 }
 0x3c7 PF: > { %s2114_s26 = sld [smem:[#allocation5_spill]]  ;;  %p1424_p3 = scmp.ge.s32.totalorder %s1591_s20, 2 }
 0x3c9   : > { %p1421_p10 = pnand %p1424_p3, %p1713_p8 }
 0x3cb   : > { %p1422_p11 = pneg %p1421_p10 }
 0x3cd   : > { %s1173_s21 = sand.u32 1, %s2114_s26  }
 0x3ce   : > { %s1174_s22 = scalar_lea.sflag [#allocation3], %s1173_s21 }
 0x3cf   : > { %1558 = dma.done.wait (%p1422_p11), %s1174_s22, 512  }
 0x3d0   : > { %1560 = vsyncadd (%p1422_p11), %s1174_s22, 4294966784  ;;  %s24_s20 = sadd.s32 1, %s1591_s20   ;;  %s2116_s25 = sld [smem:[#allocation6_spill]] }
 0x3d1   : > { %p21_p12 = scmp.ge.s32.totalorder %s24_s20, 6   ;;  %s2117_s15 = sld [smem:[#allocation12_spill]] }
 0x3d2   : > { %s2118_s16 = sld [smem:[#allocation7_spill]]  ;;  %s2122_s13 = smov %s1567_s14 }
 0x3d3   : > { %s2119_s17 = sld [smem:[#allocation8_spill]]  ;;  %23 = sbr.rel (!%p21_p12) target bundleno = 5 (0x5), region = 107 }
 0x3d4   : > { %s2120_s18 = sld [smem:[#allocation9_spill]] }
 0x3d5   : > { %s2121_s19 = sld [smem:[#allocation10_spill]] }
 0x3d6   : > { %s2123_s14 = smov %s2116_s25 }
 0x3d8   :  { %1188 = vsyncpa [#allocation3], 1 }
 0x3d9   :  { %1190 = vsyncpa [#allocation3 + $0x1], 1 }

</bundles_post_ra>
